<compile_context>
chip_gen: v5e
topology: v5e:2x2
jax: 0.10.0
libtpu: 0.0.40
codegen_flags: <defaults>
</compile_context>

<pallas_src>
import dataclasses
import functools

import jax
import jax.numpy as jnp
from jax.experimental import pallas as pl
from jax.experimental.pallas import tpu as pltpu

LANE = 128


def _round_up(n, m):
    return ((n + m - 1) // m) * m


def _vmem_capacity_bytes():
    try:
        return int(pltpu.get_tpu_info().vmem_capacity_bytes)
    except Exception:
        return 64 << 20  # conservative fallback (v7x-sized VMEM)


def _default_block_b():
    # Smaller batch tile on 64 MiB-VMEM parts (v7x); 512 on 128 MiB parts.
    return 256 if _vmem_capacity_bytes() <= (96 << 20) else 512


@dataclasses.dataclass(frozen=True)
class PreparedParams:
    """Weights preprocessed ONCE at load time (transpose + pad + cast)."""
    w1t: jax.Array    # [Dp, Hp], compute dtype (in-major: plain jnp.dot in kernel)
    b1: jax.Array     # [1, Hp], f32
    w2t: jax.Array    # [Hp, Cp], compute dtype
    b2: jax.Array     # [1, Cp], f32
    d_in: int         # original input_size
    num_classes: int  # original num_classes


def prepare_params(w1, b1, w2, b2, *, compute_dtype=jnp.bfloat16):
    """w1: [H, D]; b1: [H]; w2: [C, D]; b2: [C]  (PyTorch nn.Linear layout)."""
    H, D = w1.shape
    C, D2 = w2.shape
    assert D2 == D and b1.shape == (H,) and b2.shape == (C,)
    # The module defines linear2 = nn.Linear(input_size, num_classes), so its
    # forward only works when hidden_size == input_size.  Faithful to spec.
    assert H == D, (
        "NerualNet.forward requires hidden_size == input_size "
        "(linear2 = nn.Linear(input_size, num_classes) in the spec)")

    Dp = _round_up(D, LANE)
    Hp = _round_up(H, LANE)
    Cp = _round_up(C, LANE)

    # One-time HBM transform.  Zero padding is exact: padded input features
    # hit zero weight rows, padded hidden units get zero weight+bias
    # (ReLU(0)=0), padded classes get zero weight+bias and are sliced off.
    w1t = jnp.pad(w1.T.astype(compute_dtype), ((0, Dp - D), (0, Hp - H)))
    w2t = jnp.pad(w2.T.astype(compute_dtype), ((0, Hp - H), (0, Cp - C)))
    b1p = jnp.pad(b1.astype(jnp.float32), (0, Hp - H)).reshape(1, Hp)
    b2p = jnp.pad(b2.astype(jnp.float32), (0, Cp - C)).reshape(1, Cp)
    return PreparedParams(w1t=w1t, b1=b1p, w2t=w2t, b2=b2p,
                          d_in=D, num_classes=C)


def _mlp_kernel(x_ref, w1_ref, b1_ref, w2_ref, b2_ref, o_ref):
    # linear1 on the MXU, f32 accumulation.
    h = jnp.dot(x_ref[...], w1_ref[...], preferred_element_type=jnp.float32)
    # bias + ReLU in f32 on the VPU (v5e-friendly: no bf16 VPU needed).
    h = jnp.maximum(h + b1_ref[...], 0.0)
    # linear2 (module requires hidden_size == input_size).
    out = jnp.dot(h.astype(w2_ref.dtype), w2_ref[...],
                  preferred_element_type=jnp.float32)
    # Bias folded into the epilogue; lane-dense (Cp % 128 == 0) store.
    o_ref[...] = (out + b2_ref[...]).astype(o_ref.dtype)


def _resident_spec(shape, single_buffer):
    index_map = lambda i: (0,) * len(shape)
    if single_buffer:
        # Constant index_map => a second pipeline buffer is pure VMEM waste.
        return pl.BlockSpec(shape, index_map, pipeline_mode=pl.Buffered(1))
    return pl.BlockSpec(shape, index_map)


@functools.partial(
    jax.jit,
    static_argnames=("d_in", "num_classes", "block_b", "single_buffer_weights"))
def _forward_impl(x, w1t, b1, w2t, b2, *, d_in, num_classes, block_b,
                  single_buffer_weights):
    B, D = x.shape
    assert D == d_in, "x feature dim must equal the module's input_size"
    Dp, Hp = w1t.shape
    Hp2, Cp = w2t.shape
    assert Hp2 == Hp
    compute_dtype = w1t.dtype
    out_dtype = x.dtype
    itemsize = jnp.dtype(compute_dtype).itemsize

    # --- batch tiling: minimize padding, keep >=2 tiles when B allows so the
    # "parallel" axis can split across v7x's two TensorCores ------------------
    gran = max(8, 32 // itemsize)            # 8 f32 / 16 bf16 / 32 fp8
    nb = max(pl.cdiv(B, block_b), 2 if B >= 2 * gran else 1)
    TB = _round_up(pl.cdiv(B, nb), gran)
    nb = pl.cdiv(B, TB)
    Bp = nb * TB

    # --- per-call activation prep (only x; weights were prepared at load) ----
    xc = x.astype(compute_dtype)
    if Bp != B or Dp != D:
        xc = jnp.pad(xc, ((0, Bp - B), (0, Dp - D)))

    # --- VMEM budget sized from the actual working set -----------------------
    wbufs = 1 if single_buffer_weights else 2
    weight_bytes = wbufs * ((Dp * Hp + Hp * Cp) * itemsize + (Hp + Cp) * 4)
    act_bytes = (2 * TB * Dp * itemsize                           # x tiles (2x)
                 + 2 * TB * Cp * jnp.dtype(out_dtype).itemsize    # out tiles (2x)
                 + TB * Hp * 4)                                   # f32 intermediate
    vmem_limit = int(1.4 * (weight_bytes + act_bytes)) + (8 << 20)
    vmem_limit = min(max(vmem_limit, 32 << 20),
                     int(0.9 * _vmem_capacity_bytes()))

    cost = pl.CostEstimate(
        flops=2 * Bp * (Dp * Hp + Hp * Cp),
        transcendentals=0,
        bytes_accessed=(xc.size * itemsize
                        + (w1t.size + w2t.size) * itemsize
                        + (b1.size + b2.size) * 4
                        + Bp * Cp * jnp.dtype(out_dtype).itemsize),
    )

    out_padded = pl.pallas_call(
        _mlp_kernel,
        out_shape=jax.ShapeDtypeStruct((Bp, Cp), out_dtype),
        grid=(nb,),
        in_specs=[
            pl.BlockSpec((TB, Dp), lambda i: (i, 0)),           # x: batch-tiled
            _resident_spec((Dp, Hp), single_buffer_weights),    # w1t: resident
            _resident_spec((1, Hp), single_buffer_weights),     # b1:  resident
            _resident_spec((Hp, Cp), single_buffer_weights),    # w2t: resident
            _resident_spec((1, Cp), single_buffer_weights),     # b2:  resident
        ],
        out_specs=pl.BlockSpec((TB, Cp), lambda i: (i, 0)),
        compiler_params=pltpu.CompilerParams(
            dimension_semantics=("parallel",),
            vmem_limit_bytes=int(vmem_limit),
        ),
        cost_estimate=cost,
    )(xc, w1t, b1, w2t, b2)

    # Slice off batch / class padding outside the kernel.
    return out_padded[:B, :num_classes]


_SINGLE_BUFFER_WEIGHTS_OK = True  # flipped off if pl.Buffered(1) is rejected


def neural_net_forward(x, params, *, block_b=None):
    """x: [B, input_size]; params: PreparedParams from prepare_params()."""
    global _SINGLE_BUFFER_WEIGHTS_OK
    if block_b is None:
        block_b = _default_block_b()
    args = (x, params.w1t, params.b1, params.w2t, params.b2)
    kwargs = dict(d_in=params.d_in, num_classes=params.num_classes,
                  block_b=block_b)
    if _SINGLE_BUFFER_WEIGHTS_OK:
        try:
            return _forward_impl(*args, single_buffer_weights=True, **kwargs)
        except Exception:
            # Installed JAX/Mosaic doesn't accept single-buffered resident
            # inputs; fall back to default double-buffering (correct, just
            # uses 2x weight VMEM).
            _SINGLE_BUFFER_WEIGHTS_OK = False
    return _forward_impl(*args, single_buffer_weights=False, **kwargs)


def reference_forward(x, w1, b1, w2, b2):
    h = jnp.maximum(x @ w1.T + b1, 0.0)
    return h @ w2.T + b2


if __name__ == "__main__":
    # Small shapes consistent with the module: hidden_size == input_size
    # (required by the module's own definition of linear2).
    batch = 8
    input_size = 32
    hidden_size = 32   # must equal input_size (see note above)
    num_classes = 8

    key = jax.random.PRNGKey(0)
    kx, k1, k2, k3, k4 = jax.random.split(key, 5)

    x = jax.random.normal(kx, (batch, input_size), dtype=jnp.float32)

    # Deterministic PyTorch-like init: U(-1/sqrt(fan_in), 1/sqrt(fan_in)).
    bound1 = 1.0 / jnp.sqrt(input_size)
    w1 = jax.random.uniform(k1, (hidden_size, input_size),
                            minval=-bound1, maxval=bound1, dtype=jnp.float32)
    b1 = jax.random.uniform(k2, (hidden_size,),
                            minval=-bound1, maxval=bound1, dtype=jnp.float32)
    bound2 = 1.0 / jnp.sqrt(input_size)
    w2 = jax.random.uniform(k3, (num_classes, input_size),
                            minval=-bound2, maxval=bound2, dtype=jnp.float32)
    b2 = jax.random.uniform(k4, (num_classes,),
                            minval=-bound2, maxval=bound2, dtype=jnp.float32)

    ref = reference_forward(x, w1, b1, w2, b2)

    # Default path: bf16 MXU operands, f32 accumulation / bias / ReLU.
    params_bf16 = prepare_params(w1, b1, w2, b2)   # compute_dtype=bf16 default
    out = jax.block_until_ready(neural_net_forward(x, params_bf16))
    assert out.shape == (batch, num_classes)
    assert jnp.allclose(out, ref, atol=5e-2, rtol=5e-2), "bf16 path mismatch"

    # Exact-f32 path (tight tolerance).
    params_f32 = prepare_params(w1, b1, w2, b2, compute_dtype=jnp.float32)
    out_f32 = jax.block_until_ready(neural_net_forward(x, params_f32))
    assert jnp.allclose(out_f32, ref, atol=1e-5, rtol=1e-5), "f32 path mismatch"

    print("KERNEL_OK")
</pallas_src>

<mosaic_0001>
module attributes {stable_mosaic.version = 11 : i64} {
  func.func @_mlp_kernel(%arg0: i32, %arg1: memref<16x128xbf16, #tpu.memory_space<vmem>>, %arg2: memref<128x128xbf16, #tpu.memory_space<vmem>>, %arg3: memref<1x128xf32, #tpu.memory_space<vmem>>, %arg4: memref<128x128xbf16, #tpu.memory_space<vmem>>, %arg5: memref<1x128xf32, #tpu.memory_space<vmem>>, %arg6: memref<16x128xf32, #tpu.memory_space<vmem>>) attributes {dimension_semantics = [#tpu.dimension_semantics<parallel>], iteration_bounds = array<i64: 1>, scalar_prefetch = 0 : i64, scratch_operands = 0 : i64, tpu.core_type = #tpu.core_type<tc>, window_params = [{transform_indices = @transform_0, window_bounds = array<i64: 16, 128>}, {pipeline_mode = #tpu.pipeline_mode<synchronous>, transform_indices = @transform_1, window_bounds = array<i64: 128, 128>}, {pipeline_mode = #tpu.pipeline_mode<synchronous>, transform_indices = @transform_2, window_bounds = array<i64: 1, 128>}, {pipeline_mode = #tpu.pipeline_mode<synchronous>, transform_indices = @transform_3, window_bounds = array<i64: 128, 128>}, {pipeline_mode = #tpu.pipeline_mode<synchronous>, transform_indices = @transform_4, window_bounds = array<i64: 1, 128>}, {transform_indices = @transform_5, window_bounds = array<i64: 16, 128>}]} {
    %c0 = arith.constant 0 : index
    %c0_0 = arith.constant 0 : index
    %0 = vector.load %arg1[%c0, %c0_0] : memref<16x128xbf16, #tpu.memory_space<vmem>>, vector<16x128xbf16>
    %c0_1 = arith.constant 0 : index
    %c0_2 = arith.constant 0 : index
    %1 = vector.load %arg2[%c0_1, %c0_2] : memref<128x128xbf16, #tpu.memory_space<vmem>>, vector<128x128xbf16>
    %cst = arith.constant dense<0.000000e+00> : vector<16x128xf32>
    %2 = tpu.matmul %0, %1, %cst {dimension_numbers = #tpu.dot_dimension_numbers<[1], [0], [0], [1], [0, 0, 1, 1], [], []>} : vector<16x128xbf16>, vector<128x128xbf16>, vector<16x128xf32> -> vector<16x128xf32>
    %c0_3 = arith.constant 0 : index
    %c0_4 = arith.constant 0 : index
    %3 = vector.load %arg3[%c0_3, %c0_4] : memref<1x128xf32, #tpu.memory_space<vmem>>, vector<1x128xf32>
    %4 = vector.broadcast %3 : vector<1x128xf32> to vector<16x128xf32>
    %5 = arith.addf %2, %4 : vector<16x128xf32>
    %cst_5 = arith.constant 0.000000e+00 : f32
    %6 = vector.broadcast %cst_5 : f32 to vector<16x128xf32>
    %7 = arith.maximumf %5, %6 : vector<16x128xf32>
    %8 = arith.truncf %7 : vector<16x128xf32> to vector<16x128xbf16>
    %c0_6 = arith.constant 0 : index
    %c0_7 = arith.constant 0 : index
    %9 = vector.load %arg4[%c0_6, %c0_7] : memref<128x128xbf16, #tpu.memory_space<vmem>>, vector<128x128xbf16>
    %cst_8 = arith.constant dense<0.000000e+00> : vector<16x128xf32>
    %10 = tpu.matmul %8, %9, %cst_8 {dimension_numbers = #tpu.dot_dimension_numbers<[1], [0], [0], [1], [0, 0, 1, 1], [], []>} : vector<16x128xbf16>, vector<128x128xbf16>, vector<16x128xf32> -> vector<16x128xf32>
    %c0_9 = arith.constant 0 : index
    %c0_10 = arith.constant 0 : index
    %11 = vector.load %arg5[%c0_9, %c0_10] : memref<1x128xf32, #tpu.memory_space<vmem>>, vector<1x128xf32>
    %12 = vector.broadcast %11 : vector<1x128xf32> to vector<16x128xf32>
    %13 = arith.addf %10, %12 : vector<16x128xf32>
    %c0_11 = arith.constant 0 : index
    %c0_12 = arith.constant 0 : index
    %14 = vector.load %arg6[%c0_11, %c0_12] : memref<16x128xf32, #tpu.memory_space<vmem>>, vector<16x128xf32>
    tpu.vector_store %arg6[%c0_11, %c0_12], %13 {strides = array<i32>} : memref<16x128xf32, #tpu.memory_space<vmem>>, vector<16x128xf32>,
    return
  }
  func.func @transform_0(%arg0: i32) -> (i32, i32) {
    %c0_i32 = arith.constant 0 : i32
    %c0_i32_0 = arith.constant 0 : i32
    return %arg0, %c0_i32 : i32, i32
  }
  func.func @transform_1(%arg0: i32) -> (i32, i32) {
    %c0_i32 = arith.constant 0 : i32
    %c0_i32_0 = arith.constant 0 : i32
    %c0_i32_1 = arith.constant 0 : i32
    return %c0_i32, %c0_i32_0 : i32, i32
  }
  func.func @transform_2(%arg0: i32) -> (i32, i32) {
    %c0_i32 = arith.constant 0 : i32
    %c0_i32_0 = arith.constant 0 : i32
    %c0_i32_1 = arith.constant 0 : i32
    return %c0_i32, %c0_i32_0 : i32, i32
  }
  func.func @transform_3(%arg0: i32) -> (i32, i32) {
    %c0_i32 = arith.constant 0 : i32
    %c0_i32_0 = arith.constant 0 : i32
    %c0_i32_1 = arith.constant 0 : i32
    return %c0_i32, %c0_i32_0 : i32, i32
  }
  func.func @transform_4(%arg0: i32) -> (i32, i32) {
    %c0_i32 = arith.constant 0 : i32
    %c0_i32_0 = arith.constant 0 : i32
    %c0_i32_1 = arith.constant 0 : i32
    return %c0_i32, %c0_i32_0 : i32, i32
  }
  func.func @transform_5(%arg0: i32) -> (i32, i32) {
    %c0_i32 = arith.constant 0 : i32
    %c0_i32_0 = arith.constant 0 : i32
    return %arg0, %c0_i32 : i32, i32
  }
}

module attributes {stable_mosaic.version = 11 : i64} {
  func.func @_mlp_kernel(%arg0: i32, %arg1: memref<16x128xbf16, #tpu.memory_space<vmem>>, %arg2: memref<128x128xbf16, #tpu.memory_space<vmem>>, %arg3: memref<1x128xf32, #tpu.memory_space<vmem>>, %arg4: memref<128x128xbf16, #tpu.memory_space<vmem>>, %arg5: memref<1x128xf32, #tpu.memory_space<vmem>>, %arg6: memref<16x128xf32, #tpu.memory_space<vmem>>) attributes {dimension_semantics = [#tpu.dimension_semantics<parallel>], iteration_bounds = array<i64: 1>, scalar_prefetch = 0 : i64, scratch_operands = 0 : i64, tpu.core_type = #tpu.core_type<tc>, window_params = [{transform_indices = @transform_0, window_bounds = array<i64: 16, 128>}, {pipeline_mode = #tpu.pipeline_mode<synchronous>, transform_indices = @transform_1, window_bounds = array<i64: 128, 128>}, {pipeline_mode = #tpu.pipeline_mode<synchronous>, transform_indices = @transform_2, window_bounds = array<i64: 1, 128>}, {pipeline_mode = #tpu.pipeline_mode<synchronous>, transform_indices = @transform_3, window_bounds = array<i64: 128, 128>}, {pipeline_mode = #tpu.pipeline_mode<synchronous>, transform_indices = @transform_4, window_bounds = array<i64: 1, 128>}, {transform_indices = @transform_5, window_bounds = array<i64: 16, 128>}]} {
    %c0 = arith.constant 0 : index
    %c0_0 = arith.constant 0 : index
    %0 = vector.load %arg1[%c0, %c0_0] : memref<16x128xbf16, #tpu.memory_space<vmem>>, vector<16x128xbf16>
    %c0_1 = arith.constant 0 : index
    %c0_2 = arith.constant 0 : index
    %1 = vector.load %arg2[%c0_1, %c0_2] : memref<128x128xbf16, #tpu.memory_space<vmem>>, vector<128x128xbf16>
    %cst = arith.constant dense<0.000000e+00> : vector<16x128xf32>
    %2 = tpu.matmul %0, %1, %cst {dimension_numbers = #tpu.dot_dimension_numbers<[1], [0], [0], [1], [0, 0, 1, 1], [], []>} : vector<16x128xbf16>, vector<128x128xbf16>, vector<16x128xf32> -> vector<16x128xf32>
    %c0_3 = arith.constant 0 : index
    %c0_4 = arith.constant 0 : index
    %3 = vector.load %arg3[%c0_3, %c0_4] : memref<1x128xf32, #tpu.memory_space<vmem>>, vector<1x128xf32>
    %4 = vector.broadcast %3 : vector<1x128xf32> to vector<16x128xf32>
    %5 = arith.addf %2, %4 : vector<16x128xf32>
    %cst_5 = arith.constant 0.000000e+00 : f32
    %6 = vector.broadcast %cst_5 : f32 to vector<16x128xf32>
    %7 = arith.maximumf %5, %6 : vector<16x128xf32>
    %8 = arith.truncf %7 : vector<16x128xf32> to vector<16x128xbf16>
    %c0_6 = arith.constant 0 : index
    %c0_7 = arith.constant 0 : index
    %9 = vector.load %arg4[%c0_6, %c0_7] : memref<128x128xbf16, #tpu.memory_space<vmem>>, vector<128x128xbf16>
    %cst_8 = arith.constant dense<0.000000e+00> : vector<16x128xf32>
    %10 = tpu.matmul %8, %9, %cst_8 {dimension_numbers = #tpu.dot_dimension_numbers<[1], [0], [0], [1], [0, 0, 1, 1], [], []>} : vector<16x128xbf16>, vector<128x128xbf16>, vector<16x128xf32> -> vector<16x128xf32>
    %c0_9 = arith.constant 0 : index
    %c0_10 = arith.constant 0 : index
    %11 = vector.load %arg5[%c0_9, %c0_10] : memref<1x128xf32, #tpu.memory_space<vmem>>, vector<1x128xf32>
    %12 = vector.broadcast %11 : vector<1x128xf32> to vector<16x128xf32>
    %13 = arith.addf %10, %12 : vector<16x128xf32>
    %c0_11 = arith.constant 0 : index
    %c0_12 = arith.constant 0 : index
    %14 = vector.load %arg6[%c0_11, %c0_12] : memref<16x128xf32, #tpu.memory_space<vmem>>, vector<16x128xf32>
    tpu.vector_store %arg6[%c0_11, %c0_12], %13 {strides = array<i32>} : memref<16x128xf32, #tpu.memory_space<vmem>>, vector<16x128xf32>,
    return
  }
  func.func @transform_0(%arg0: i32) -> (i32, i32) {
    %c0_i32 = arith.constant 0 : i32
    %c0_i32_0 = arith.constant 0 : i32
    return %arg0, %c0_i32 : i32, i32
  }
  func.func @transform_1(%arg0: i32) -> (i32, i32) {
    %c0_i32 = arith.constant 0 : i32
    %c0_i32_0 = arith.constant 0 : i32
    %c0_i32_1 = arith.constant 0 : i32
    return %c0_i32, %c0_i32_0 : i32, i32
  }
  func.func @transform_2(%arg0: i32) -> (i32, i32) {
    %c0_i32 = arith.constant 0 : i32
    %c0_i32_0 = arith.constant 0 : i32
    %c0_i32_1 = arith.constant 0 : i32
    return %c0_i32, %c0_i32_0 : i32, i32
  }
  func.func @transform_3(%arg0: i32) -> (i32, i32) {
    %c0_i32 = arith.constant 0 : i32
    %c0_i32_0 = arith.constant 0 : i32
    %c0_i32_1 = arith.constant 0 : i32
    return %c0_i32, %c0_i32_0 : i32, i32
  }
  func.func @transform_4(%arg0: i32) -> (i32, i32) {
    %c0_i32 = arith.constant 0 : i32
    %c0_i32_0 = arith.constant 0 : i32
    %c0_i32_1 = arith.constant 0 : i32
    return %c0_i32, %c0_i32_0 : i32, i32
  }
  func.func @transform_5(%arg0: i32) -> (i32, i32) {
    %c0_i32 = arith.constant 0 : i32
    %c0_i32_0 = arith.constant 0 : i32
    return %arg0, %c0_i32 : i32, i32
  }
}

</mosaic_0001>

<bundles_post_ra>
// kernel: _forward_impl.1
= control target key start
LH: loop header
LB: loop body
LE: loop exit
PB: predicated region body
PF: predicated region fallthrough
CT: control target
= control target key end

     0   :  { %10 = vsyncpa [#allocation3], 0  ;;  %s433_s0 = inlined_call_operand.vmem [shape: bf16[16,128], index: 0, kind: input, shape index: {}]   ;;  %s434_s1 = inlined_call_operand.hbm [shape: bf16[128,128], index: 1, kind: input, shape index: {}]   ;;  %s435_s2 = inlined_call_operand.vmem [shape: f32[1,128], index: 2, kind: input, shape index: {}]   ;;  %s436_s3 = inlined_call_operand.hbm [shape: bf16[128,128], index: 3, kind: input, shape index: {}]   ;;  %s437_s4 = inlined_call_operand.vmem [shape: f32[1,128], index: 4, kind: input, shape index: {}]   ;;  %s438_s5 = inlined_call_operand.vmem [shape: f32[16,128], index: 5, kind: output, shape index: {}]  }
   0x1   :  { %s18_s20 = sshll.u32 %s434_s1, 4  ;;  %s19_s20 = int_to_ptr.hbm [resolvable:$true] %s18_s20 }
   0x2   :  { %11 = vsyncpa [#allocation5], 0  ;;  %s378_s21 = smov [#allocation2]   ;;  %s33_s25 = sshll.u32 %s436_s3, 4  ;;  %s34_s25 = int_to_ptr.hbm [resolvable:$true] %s33_s25 }
   0x3   :  { %s20_s22 = sshll.u32 %s378_s21, 4  ;;  %s379_s26 = smov 64   ;;  %s21_s22 = int_to_ptr.vmem [resolvable:$true] %s20_s22 }
   0x4   :  { %s380_s27 = smov 4   ;;  %s381_s28 = smov [#allocation4]  }
   0x5   :  { %26 = dma.hbm_to_vmem [thread:$0]  %s19_s20, 1024, %s21_s22, [#allocation3], %s379_s26, %s379_s26, %s380_s27  }
   0x6   :  { %s35_s29 = sshll.u32 %s381_s28, 4  ;;  %s36_s29 = int_to_ptr.vmem [resolvable:$true] %s35_s29 }
   0x7   :  { %41 = dma.hbm_to_vmem [thread:$0]  %s34_s25, 1024, %s36_s29, [#allocation5], %s379_s26, %s379_s26, %s380_s27  }
   0x8   :  { %374 = dma.done.wait [#allocation3], 1024  }
   0x9   :  { %375 = vsyncadd [#allocation3], 4294966272 }
   0xa   :  { %376 = dma.done.wait [#allocation5], 1024  }
   0xb   :  { %377 = vsyncadd [#allocation5], 4294966272  ;;  %v311_v0 = vld [vmem:[#allocation2 + $0x38] sm:$0xff]  ;;  %v310_v1 = vld [vmem:[#allocation2 + $0x30] sm:$0xff] }
   0xc   :  { %128 = vmatpush.bf16.msra.mxu0 %v311_v0  ;;  %v319_v2 = vld [vmem:[#allocation4 + $0x38] sm:$0xff]  ;;  %v318_v3 = vld [vmem:[#allocation4 + $0x30] sm:$0xff]  ;;  %v309_v4 = vld [vmem:[#allocation2 + $0x28] sm:$0xff] }
   0xd   :  { %213 = vmatpush.bf16.msra.mxu1 %v319_v2  ;;  %v317_v5 = vld [vmem:[#allocation4 + $0x28] sm:$0xff]  ;;  %v308_v6 = vld [vmem:[#allocation2 + $0x20] sm:$0xff]  ;;  %v307_v8 = vld [vmem:[#allocation2 + $0x18] sm:$0xff] }
   0xe   :  { %v316_v7 = vld [vmem:[#allocation4 + $0x20] sm:$0xff]  ;;  %v306_v9 = vld [vmem:[#allocation2 + $0x10] sm:$0xff]  ;;  %v305_v10 = vld [vmem:[#allocation2 + $0x8] sm:$0xff] }
   0xf   :  { %v304_v11 = vld [vmem:[#allocation2] sm:$0xff]  ;;  %v315_v13 = vld [vmem:[#allocation4 + $0x18] sm:$0xff]  ;;  %v314_v14 = vld [vmem:[#allocation4 + $0x10] sm:$0xff] }
  0x10   :  { %129 = vmatpush.bf16.msra.mxu0 %v310_v1  ;;  %v303_v12 = vld [vmem:[%s433_s0] sm:$0xff]  ;;  %v313_v15 = vld [vmem:[#allocation4 + $0x8] sm:$0xff] }
  0x11   :  { %214 = vmatpush.bf16.msra.mxu1 %v318_v3  ;;  %v312_v16 = vld [vmem:[#allocation4] sm:$0xff] }
  0x12   :  { %v324_v18 = vld [vmem:[%s435_s2] ss:$0 sm:$0xff] }
  0x13   :  { %v325_v25 = vld [vmem:[%s437_s4] ss:$0 sm:$0xff] }
  0x14   :  { %130 = vmatpush.bf16.msra.mxu0 %v309_v4 }
  0x15   :  { %215 = vmatpush.bf16.msra.mxu1 %v317_v5 }
  0x18   :  { %131 = vmatpush.bf16.msra.mxu0 %v308_v6 }
  0x19   :  { %216 = vmatpush.bf16.msra.mxu1 %v316_v7 }
  0x1c   :  { %132 = vmatpush.bf16.msra.mxu0 %v307_v8 }
  0x1d   :  { %217 = vmatpush.bf16.msra.mxu1 %v315_v13 }
  0x20   :  { %133 = vmatpush.bf16.msra.mxu0 %v306_v9 }
  0x21   :  { %218 = vmatpush.bf16.msra.mxu1 %v314_v14 }
  0x24   :  { %134 = vmatpush.bf16.msra.mxu0 %v305_v10 }
  0x25   :  { %219 = vmatpush.bf16.msra.mxu1 %v313_v15 }
  0x28   :  { %135 = vmatpush.bf16.msra.mxu0 %v304_v11 }
  0x29   :  { %220 = vmatpush.bf16.msra.mxu1 %v312_v16 }
  0x2b   :  { %136 = vmatmul.bf16.vlgmr.msra.gmra.mxu0 %v303_v12 }
  0xa8   :  { %v137_v17 = vpop.f32.mrf.mxu0 }
  0xa9   :  { %v138_v19 = vadd.f32 %v324_v18, %v137_v17 }
  0xab   :  { %v142_v22 = vmax.f32 %v138_v19, 0.0 }
  0xb0   :  { %v139_v20 = vpop.f32.mrf.mxu0 }
  0xb1   :  { %v140_v21 = vadd.f32 %v324_v18, %v139_v20 }
  0xb3   :  { %v143_v23 = vmax.f32 %v140_v21, 0.0 }
  0xb5   :  { %v144_v24 = vpack.c.bf16 %v143_v23, %v142_v22 }
  0xb7   :  { %221 = vmatmul.bf16.vlgmr.msra.gmra.mxu1 %v144_v24 }
 0x134   :  { %v222_v26 = vpop.f32.mrf.mxu1 }
 0x135   :  { %v223_v27 = vadd.f32 %v325_v25, %v222_v26 }
 0x137   :  { %227 = vst [vmem:[%s438_s5] sm:$0xff] %v223_v27 }
 0x13c   :  { %v224_v28 = vpop.f32.mrf.mxu1 }
 0x13d   :  { %v225_v29 = vadd.f32 %v325_v25, %v224_v28 }
 0x13f   :  { %228 = vst [vmem:[%s438_s5 + $0x8] sm:$0xff] %v225_v29 }
 0x140   :  { %233 = vsyncpa [#allocation3], 1 }
 0x141   :  { %234 = vsyncpa [#allocation5], 1 }

// kernel: _forward_impl.1
= control target key start
LH: loop header
LB: loop body
LE: loop exit
PB: predicated region body
PF: predicated region fallthrough
CT: control target
= control target key end

     0   :  { %10 = vsyncpa [#allocation3], 0  ;;  %s433_s0 = inlined_call_operand.vmem [shape: bf16[16,128], index: 0, kind: input, shape index: {}]   ;;  %s434_s1 = inlined_call_operand.hbm [shape: bf16[128,128], index: 1, kind: input, shape index: {}]   ;;  %s435_s2 = inlined_call_operand.vmem [shape: f32[1,128], index: 2, kind: input, shape index: {}]   ;;  %s436_s3 = inlined_call_operand.hbm [shape: bf16[128,128], index: 3, kind: input, shape index: {}]   ;;  %s437_s4 = inlined_call_operand.vmem [shape: f32[1,128], index: 4, kind: input, shape index: {}]   ;;  %s438_s5 = inlined_call_operand.vmem [shape: f32[16,128], index: 5, kind: output, shape index: {}]  }
   0x1   :  { %s18_s20 = sshll.u32 %s434_s1, 4  ;;  %s19_s20 = int_to_ptr.hbm [resolvable:$true] %s18_s20 }
   0x2   :  { %11 = vsyncpa [#allocation5], 0  ;;  %s378_s21 = smov [#allocation2]   ;;  %s33_s25 = sshll.u32 %s436_s3, 4  ;;  %s34_s25 = int_to_ptr.hbm [resolvable:$true] %s33_s25 }
   0x3   :  { %s20_s22 = sshll.u32 %s378_s21, 4  ;;  %s379_s26 = smov 64   ;;  %s21_s22 = int_to_ptr.vmem [resolvable:$true] %s20_s22 }
   0x4   :  { %s380_s27 = smov 4   ;;  %s381_s28 = smov [#allocation4]  }
   0x5   :  { %26 = dma.hbm_to_vmem [thread:$0]  %s19_s20, 1024, %s21_s22, [#allocation3], %s379_s26, %s379_s26, %s380_s27  }
   0x6   :  { %s35_s29 = sshll.u32 %s381_s28, 4  ;;  %s36_s29 = int_to_ptr.vmem [resolvable:$true] %s35_s29 }
   0x7   :  { %41 = dma.hbm_to_vmem [thread:$0]  %s34_s25, 1024, %s36_s29, [#allocation5], %s379_s26, %s379_s26, %s380_s27  }
   0x8   :  { %374 = dma.done.wait [#allocation3], 1024  }
   0x9   :  { %375 = vsyncadd [#allocation3], 4294966272 }
   0xa   :  { %376 = dma.done.wait [#allocation5], 1024  }
   0xb   :  { %377 = vsyncadd [#allocation5], 4294966272  ;;  %v311_v0 = vld [vmem:[#allocation2 + $0x38] sm:$0xff]  ;;  %v310_v1 = vld [vmem:[#allocation2 + $0x30] sm:$0xff] }
   0xc   :  { %128 = vmatpush.bf16.msra.mxu0 %v311_v0  ;;  %v319_v2 = vld [vmem:[#allocation4 + $0x38] sm:$0xff]  ;;  %v318_v3 = vld [vmem:[#allocation4 + $0x30] sm:$0xff]  ;;  %v309_v4 = vld [vmem:[#allocation2 + $0x28] sm:$0xff] }
   0xd   :  { %213 = vmatpush.bf16.msra.mxu1 %v319_v2  ;;  %v317_v5 = vld [vmem:[#allocation4 + $0x28] sm:$0xff]  ;;  %v308_v6 = vld [vmem:[#allocation2 + $0x20] sm:$0xff]  ;;  %v307_v8 = vld [vmem:[#allocation2 + $0x18] sm:$0xff] }
   0xe   :  { %v316_v7 = vld [vmem:[#allocation4 + $0x20] sm:$0xff]  ;;  %v306_v9 = vld [vmem:[#allocation2 + $0x10] sm:$0xff]  ;;  %v305_v10 = vld [vmem:[#allocation2 + $0x8] sm:$0xff] }
   0xf   :  { %v304_v11 = vld [vmem:[#allocation2] sm:$0xff]  ;;  %v315_v13 = vld [vmem:[#allocation4 + $0x18] sm:$0xff]  ;;  %v314_v14 = vld [vmem:[#allocation4 + $0x10] sm:$0xff] }
  0x10   :  { %129 = vmatpush.bf16.msra.mxu0 %v310_v1  ;;  %v303_v12 = vld [vmem:[%s433_s0] sm:$0xff]  ;;  %v313_v15 = vld [vmem:[#allocation4 + $0x8] sm:$0xff] }
  0x11   :  { %214 = vmatpush.bf16.msra.mxu1 %v318_v3  ;;  %v312_v16 = vld [vmem:[#allocation4] sm:$0xff] }
  0x12   :  { %v324_v18 = vld [vmem:[%s435_s2] ss:$0 sm:$0xff] }
  0x13   :  { %v325_v25 = vld [vmem:[%s437_s4] ss:$0 sm:$0xff] }
  0x14   :  { %130 = vmatpush.bf16.msra.mxu0 %v309_v4 }
  0x15   :  { %215 = vmatpush.bf16.msra.mxu1 %v317_v5 }
  0x18   :  { %131 = vmatpush.bf16.msra.mxu0 %v308_v6 }
  0x19   :  { %216 = vmatpush.bf16.msra.mxu1 %v316_v7 }
  0x1c   :  { %132 = vmatpush.bf16.msra.mxu0 %v307_v8 }
  0x1d   :  { %217 = vmatpush.bf16.msra.mxu1 %v315_v13 }
  0x20   :  { %133 = vmatpush.bf16.msra.mxu0 %v306_v9 }
  0x21   :  { %218 = vmatpush.bf16.msra.mxu1 %v314_v14 }
  0x24   :  { %134 = vmatpush.bf16.msra.mxu0 %v305_v10 }
  0x25   :  { %219 = vmatpush.bf16.msra.mxu1 %v313_v15 }
  0x28   :  { %135 = vmatpush.bf16.msra.mxu0 %v304_v11 }
  0x29   :  { %220 = vmatpush.bf16.msra.mxu1 %v312_v16 }
  0x2b   :  { %136 = vmatmul.bf16.vlgmr.msra.gmra.mxu0 %v303_v12 }
  0xa8   :  { %v137_v17 = vpop.f32.mrf.mxu0 }
  0xa9   :  { %v138_v19 = vadd.f32 %v324_v18, %v137_v17 }
  0xab   :  { %v142_v22 = vmax.f32 %v138_v19, 0.0 }
  0xb0   :  { %v139_v20 = vpop.f32.mrf.mxu0 }
  0xb1   :  { %v140_v21 = vadd.f32 %v324_v18, %v139_v20 }
  0xb3   :  { %v143_v23 = vmax.f32 %v140_v21, 0.0 }
  0xb5   :  { %v144_v24 = vpack.c.bf16 %v143_v23, %v142_v22 }
  0xb7   :  { %221 = vmatmul.bf16.vlgmr.msra.gmra.mxu1 %v144_v24 }
 0x134   :  { %v222_v26 = vpop.f32.mrf.mxu1 }
 0x135   :  { %v223_v27 = vadd.f32 %v325_v25, %v222_v26 }
 0x137   :  { %227 = vst [vmem:[%s438_s5] sm:$0xff] %v223_v27 }
 0x13c   :  { %v224_v28 = vpop.f32.mrf.mxu1 }
 0x13d   :  { %v225_v29 = vadd.f32 %v325_v25, %v224_v28 }
 0x13f   :  { %228 = vst [vmem:[%s438_s5 + $0x8] sm:$0xff] %v225_v29 }
 0x140   :  { %233 = vsyncpa [#allocation3], 1 }
 0x141   :  { %234 = vsyncpa [#allocation5], 1 }

</bundles_post_ra>
